<compile_context>
chip_gen: v5e
topology: v5e:2x2
jax: 0.10.0
libtpu: 0.0.40
codegen_flags: <defaults>
</compile_context>

<pallas_src>
import functools

import jax
import jax.numpy as jnp
from jax import lax
from jax.experimental import pallas as pl
from jax.experimental.pallas import tpu as pltpu


def _round_up(n, m):
    return ((n + m - 1) // m) * m


def _make_kernel(feature_major):
    def kernel(x_ref,
               w1_ref, b1_ref,
               w2_ref, b2_ref,
               w3_ref, b3_ref,
               w4_ref, b4_ref,
               w5_ref, b5_ref,
               out_ref):
        """One batch tile of the MLP in transposed layout (features on sublanes,
        batch on lanes) so every intermediate and the result row are lane-dense.

        x_ref  : (TILE_B, in) f32 (batch-major) or (in, TILE_B) f32 (feature-major)
        w1..w4 : (out, in) bf16 ; b1..b4 : (out, 1) f32 columns
        w5_ref : (16, 1) f32    ; b5_ref : (1, 1) f32
        out_ref: (1, 1, TILE_B) f32 lane-dense output row for this tile
        """
        # MXU operands bf16 (single-pass MXU path); f32 accumulation / VPU math.
        x = x_ref[...].astype(jnp.bfloat16)
        if feature_major:
            # x is (in, TILE_B): plain (128, in) x (in, TILE_B) matmul, no transpose.
            h = jnp.dot(w1_ref[...], x, preferred_element_type=jnp.float32)
        else:
            # Contract `in` of W1 (128, in) with `in` of x (TILE_B, in) -> (128, TILE_B).
            h = lax.dot_general(
                w1_ref[...], x,
                dimension_numbers=(((1,), (1,)), ((), ())),
                preferred_element_type=jnp.float32)
        h = jnp.maximum(h + b1_ref[...], 0.0)

        # Layers 2-4: W @ h; batch stays on the lane axis throughout.
        for w_ref, b_ref in ((w2_ref, b2_ref), (w3_ref, b3_ref), (w4_ref, b4_ref)):
            h = jnp.dot(w_ref[...], h.astype(jnp.bfloat16),
                        preferred_element_type=jnp.float32) + b_ref[...]
            h = jnp.maximum(h, 0.0)

        # Layer 5 (16 -> 1): pure-f32 weighted sublane reduce (VPU/XLU), not an
        # M=1 MXU matmul.
        z = jnp.sum(w5_ref[...] * h, axis=0, keepdims=True) + b5_ref[...]   # (1, TILE_B)

        # scale_output(z, 2, 7) = 2 + (7 - 2) * sigmoid(z)
        out_ref[...] = (2.0 + 5.0 * jax.nn.sigmoid(z))[None].astype(out_ref.dtype)

    return kernel


@functools.partial(jax.jit, static_argnames=("tile_b", "feature_major"))
def mapping_nn_forward(x, params, tile_b=None, feature_major=False):
    """x: (batch, input_size) f32, or (input_size, batch) if feature_major=True.
    params: list of (W, b), W in PyTorch (out, in) layout, b of shape (out,)."""
    if feature_major:
        input_size, batch = x.shape
    else:
        batch, input_size = x.shape

    if tile_b is None:
        padded_b = _round_up(batch, 128)
        if padded_b <= 128:
            tile_b = 128
        else:
            # >= 2 grid steps so ("parallel",) can shard across both v7x TCs; cap
            # per-step rows at 2048 to amortize the ~0.35us/step overhead while
            # staying well under v5e's 16 MiB scoped-VMEM default.
            tile_b = min(2048, _round_up(padded_b // 2, 128))
    assert tile_b % 128 == 0, "tile_b must be a multiple of 128 (lane width)"

    num_tiles = pl.cdiv(batch, tile_b)   # no jnp.pad: ragged tail block reads OOB
                                         # garbage rows, sliced off below.

    (w1, b1), (w2, b2), (w3, b3), (w4, b4), (w5, b5) = params
    bf = lambda w: w.astype(jnp.bfloat16)                    # MXU operand dtype
    col = lambda b: b.reshape(-1, 1).astype(jnp.float32)     # biases as (out, 1) cols
    flat = [x,
            bf(w1), col(b1), bf(w2), col(b2), bf(w3), col(b3), bf(w4), col(b4),
            w5.reshape(-1, 1).astype(jnp.float32), col(b5)]  # w5 as (16, 1) f32 column

    const_map = lambda i: (0, 0)   # weights stay VMEM-resident across grid steps
    if feature_major:
        x_spec = pl.BlockSpec((input_size, tile_b), lambda i: (0, i))
    else:
        x_spec = pl.BlockSpec((tile_b, input_size), lambda i: (i, 0))
    in_specs = [x_spec] + [pl.BlockSpec(p.shape, const_map) for p in flat[1:]]

    # Regime: MXU-cadence bound at realistic batch (tiny K/M under-fill the MXU);
    # this estimate is advisory for XLA scheduling only.
    flops = 2 * batch * (input_size * 128 + 128 * 64 + 64 * 32 + 32 * 16 + 16 * 1)
    param_bytes = sum(int(p.size) * p.dtype.itemsize for p in flat[1:])
    cost = pl.CostEstimate(
        flops=flops,
        transcendentals=num_tiles * tile_b,   # one sigmoid per output lane
        bytes_accessed=batch * input_size * 4 + num_tiles * tile_b * 4 + param_bytes)

    # Rough VMEM need: double-buffered x tile + double-buffered output row +
    # intermediates (dominated by the (128, TILE_B) layer-1 activation) + weights.
    vmem_need = (2 * tile_b * input_size * 4
                 + 2 * 8 * tile_b * 4
                 + 4 * 128 * tile_b * 4
                 + (1 << 20))
    vmem_limit = None
    if vmem_need > (15 << 20):   # only override past v5e's 16 MiB scoped default
        vmem_limit = min(int(vmem_need * 3 // 2), 96 << 20)

    out3 = pl.pallas_call(
        _make_kernel(feature_major),
        out_shape=jax.ShapeDtypeStruct((num_tiles, 1, tile_b), jnp.float32),
        grid=(num_tiles,),
        in_specs=in_specs,
        out_specs=pl.BlockSpec((1, 1, tile_b), lambda i: (i, 0, 0)),
        compiler_params=pltpu.CompilerParams(
            dimension_semantics=("parallel",),
            vmem_limit_bytes=vmem_limit),
        cost_estimate=cost,
    )(*flat)

    # (num_tiles, 1, tile_b) row-major == batch order; drop the garbage tail rows.
    return out3.reshape(-1)[:batch].reshape(batch, 1)


def init_params(key, input_size):
    """Kaiming-normal (fan_in, relu) weights, zero biases — matches the PyTorch init.
    Weights kept in PyTorch (out, in) layout."""
    sizes = [input_size, 128, 64, 32, 16, 1]
    params = []
    for i in range(len(sizes) - 1):
        fan_in, fan_out = sizes[i], sizes[i + 1]
        key, sub = jax.random.split(key)
        std = (2.0 / fan_in) ** 0.5  # kaiming_normal_, mode='fan_in', nonlinearity='relu'
        w = std * jax.random.normal(sub, (fan_out, fan_in), dtype=jnp.float32)
        b = jnp.zeros((fan_out,), dtype=jnp.float32)
        params.append((w, b))
    return params


if __name__ == "__main__":
    key = jax.random.PRNGKey(0)
    key, xkey = jax.random.split(key)

    batch = 300          # deliberately ragged vs. the 128-lane tile / tile_b
    input_size = 32

    x = jax.random.normal(xkey, (batch, input_size), dtype=jnp.float32)
    params = init_params(key, input_size)

    # Default heuristic: tile_b=256 here -> 2 grid steps (both v7x TCs busy),
    # ragged tail block read directly from HBM (no wrapper jnp.pad copy).
    out = jax.block_until_ready(mapping_nn_forward(x, params))

    # Explicit small tile: 3-step grid, resident weights, ragged tail.
    out_tiled = jax.block_until_ready(mapping_nn_forward(x, params, tile_b=128))

    # Feature-major caller layout (input_size, batch): plain layer-1 matmul,
    # no per-tile XLU transpose of the x block.
    out_fm = jax.block_until_ready(mapping_nn_forward(x.T, params, feature_major=True))

    # ---- references -------------------------------------------------------
    def ref_forward(xf, ps, bf16_matmul):
        h = xf
        for i, (w, b) in enumerate(ps):
            if i < 4:
                if bf16_matmul:   # mirrors the kernel: bf16 operands, f32 accumulate
                    h = jnp.dot(h.astype(jnp.bfloat16), w.astype(jnp.bfloat16).T,
                                preferred_element_type=jnp.float32) + b
                else:             # true-f32 reference
                    h = jnp.dot(h, w.T, precision=lax.Precision.HIGHEST) + b
                h = jnp.maximum(h, 0.0)
            else:
                # final 16 -> 1 layer is a pure-f32 weighted reduce in the kernel
                h = jnp.sum(h * w[0], axis=-1, keepdims=True) + b
        return 2.0 + 5.0 * jax.nn.sigmoid(h)

    ref_bf16 = ref_forward(x, params, bf16_matmul=True)    # matches kernel numerics
    ref_f32 = ref_forward(x, params, bf16_matmul=False)    # sanity check

    for o in (out, out_tiled, out_fm):
        assert o.shape == (batch, 1)
        assert jnp.allclose(o, ref_bf16, atol=2e-3, rtol=2e-3)
        # bf16 MXU operands -> documented ~1e-3..1e-2 deviation from true f32
        assert jnp.allclose(o, ref_f32, atol=1e-1, rtol=5e-2)
        assert bool(jnp.all((o >= 2.0) & (o <= 7.0)))

    print("KERNEL_OK")
</pallas_src>

<mosaic_0001>
module attributes {stable_mosaic.version = 11 : i64} {
  func.func @kernel(%arg0: i32, %arg1: memref<256x32xf32, #tpu.memory_space<vmem>>, %arg2: memref<128x32xbf16, #tpu.memory_space<vmem>>, %arg3: memref<128x1xf32, #tpu.memory_space<vmem>>, %arg4: memref<64x128xbf16, #tpu.memory_space<vmem>>, %arg5: memref<64x1xf32, #tpu.memory_space<vmem>>, %arg6: memref<32x64xbf16, #tpu.memory_space<vmem>>, %arg7: memref<32x1xf32, #tpu.memory_space<vmem>>, %arg8: memref<16x32xbf16, #tpu.memory_space<vmem>>, %arg9: memref<16x1xf32, #tpu.memory_space<vmem>>, %arg10: memref<16x1xf32, #tpu.memory_space<vmem>>, %arg11: memref<1x1xf32, #tpu.memory_space<vmem>>, %arg12: memref<1x1x256xf32, #tpu.memory_space<vmem>>) attributes {dimension_semantics = [#tpu.dimension_semantics<parallel>], iteration_bounds = array<i64: 2>, scalar_prefetch = 0 : i64, scratch_operands = 0 : i64, tpu.core_type = #tpu.core_type<tc>, window_params = [{transform_indices = @transform_0, window_bounds = array<i64: 256, 32>}, {pipeline_mode = #tpu.pipeline_mode<synchronous>, transform_indices = @transform_1, window_bounds = array<i64: 128, 32>}, {pipeline_mode = #tpu.pipeline_mode<synchronous>, transform_indices = @transform_2, window_bounds = array<i64: 128, 1>}, {pipeline_mode = #tpu.pipeline_mode<synchronous>, transform_indices = @transform_3, window_bounds = array<i64: 64, 128>}, {pipeline_mode = #tpu.pipeline_mode<synchronous>, transform_indices = @transform_4, window_bounds = array<i64: 64, 1>}, {pipeline_mode = #tpu.pipeline_mode<synchronous>, transform_indices = @transform_5, window_bounds = array<i64: 32, 64>}, {pipeline_mode = #tpu.pipeline_mode<synchronous>, transform_indices = @transform_6, window_bounds = array<i64: 32, 1>}, {pipeline_mode = #tpu.pipeline_mode<synchronous>, transform_indices = @transform_7, window_bounds = array<i64: 16, 32>}, {pipeline_mode = #tpu.pipeline_mode<synchronous>, transform_indices = @transform_8, window_bounds = array<i64: 16, 1>}, {pipeline_mode = #tpu.pipeline_mode<synchronous>, transform_indices = @transform_9, window_bounds = array<i64: 16, 1>}, {pipeline_mode = #tpu.pipeline_mode<synchronous>, transform_indices = @transform_10, window_bounds = array<i64: 1, 1>}, {transform_indices = @transform_11, window_bounds = array<i64: 1, 1, 256>}]} {
    %c0 = arith.constant 0 : index
    %c0_0 = arith.constant 0 : index
    %0 = vector.load %arg1[%c0, %c0_0] : memref<256x32xf32, #tpu.memory_space<vmem>>, vector<256x32xf32>
    %1 = arith.truncf %0 : vector<256x32xf32> to vector<256x32xbf16>
    %c0_1 = arith.constant 0 : index
    %c0_2 = arith.constant 0 : index
    %2 = vector.load %arg2[%c0_1, %c0_2] : memref<128x32xbf16, #tpu.memory_space<vmem>>, vector<128x32xbf16>
    %cst = arith.constant dense<0.000000e+00> : vector<128x256xf32>
    %3 = tpu.matmul %2, %1, %cst {dimension_numbers = #tpu.dot_dimension_numbers<[1], [1], [0], [0], [0, 0, 1, 0], [], []>} : vector<128x32xbf16>, vector<256x32xbf16>, vector<128x256xf32> -> vector<128x256xf32>
    %c0_3 = arith.constant 0 : index
    %c0_4 = arith.constant 0 : index
    %4 = vector.load %arg3[%c0_3, %c0_4] : memref<128x1xf32, #tpu.memory_space<vmem>>, vector<128x1xf32>
    %5 = vector.broadcast %4 : vector<128x1xf32> to vector<128x256xf32>
    %6 = arith.addf %3, %5 : vector<128x256xf32>
    %cst_5 = arith.constant 0.000000e+00 : f32
    %7 = vector.broadcast %cst_5 : f32 to vector<128x256xf32>
    %8 = arith.maximumf %6, %7 : vector<128x256xf32>
    %c0_6 = arith.constant 0 : index
    %c0_7 = arith.constant 0 : index
    %9 = vector.load %arg4[%c0_6, %c0_7] : memref<64x128xbf16, #tpu.memory_space<vmem>>, vector<64x128xbf16>
    %10 = arith.truncf %8 : vector<128x256xf32> to vector<128x256xbf16>
    %cst_8 = arith.constant dense<0.000000e+00> : vector<64x256xf32>
    %11 = tpu.matmul %9, %10, %cst_8 {dimension_numbers = #tpu.dot_dimension_numbers<[1], [0], [0], [1], [0, 0, 1, 1], [], []>} : vector<64x128xbf16>, vector<128x256xbf16>, vector<64x256xf32> -> vector<64x256xf32>
    %c0_9 = arith.constant 0 : index
    %c0_10 = arith.constant 0 : index
    %12 = vector.load %arg5[%c0_9, %c0_10] : memref<64x1xf32, #tpu.memory_space<vmem>>, vector<64x1xf32>
    %13 = vector.broadcast %12 : vector<64x1xf32> to vector<64x256xf32>
    %14 = arith.addf %11, %13 : vector<64x256xf32>
    %cst_11 = arith.constant 0.000000e+00 : f32
    %15 = vector.broadcast %cst_11 : f32 to vector<64x256xf32>
    %16 = arith.maximumf %14, %15 : vector<64x256xf32>
    %c0_12 = arith.constant 0 : index
    %c0_13 = arith.constant 0 : index
    %17 = vector.load %arg6[%c0_12, %c0_13] : memref<32x64xbf16, #tpu.memory_space<vmem>>, vector<32x64xbf16>
    %18 = arith.truncf %16 : vector<64x256xf32> to vector<64x256xbf16>
    %cst_14 = arith.constant dense<0.000000e+00> : vector<32x256xf32>
    %19 = tpu.matmul %17, %18, %cst_14 {dimension_numbers = #tpu.dot_dimension_numbers<[1], [0], [0], [1], [0, 0, 1, 1], [], []>} : vector<32x64xbf16>, vector<64x256xbf16>, vector<32x256xf32> -> vector<32x256xf32>
    %c0_15 = arith.constant 0 : index
    %c0_16 = arith.constant 0 : index
    %20 = vector.load %arg7[%c0_15, %c0_16] : memref<32x1xf32, #tpu.memory_space<vmem>>, vector<32x1xf32>
    %21 = vector.broadcast %20 : vector<32x1xf32> to vector<32x256xf32>
    %22 = arith.addf %19, %21 : vector<32x256xf32>
    %cst_17 = arith.constant 0.000000e+00 : f32
    %23 = vector.broadcast %cst_17 : f32 to vector<32x256xf32>
    %24 = arith.maximumf %22, %23 : vector<32x256xf32>
    %c0_18 = arith.constant 0 : index
    %c0_19 = arith.constant 0 : index
    %25 = vector.load %arg8[%c0_18, %c0_19] : memref<16x32xbf16, #tpu.memory_space<vmem>>, vector<16x32xbf16>
    %26 = arith.truncf %24 : vector<32x256xf32> to vector<32x256xbf16>
    %cst_20 = arith.constant dense<0.000000e+00> : vector<16x256xf32>
    %27 = tpu.matmul %25, %26, %cst_20 {dimension_numbers = #tpu.dot_dimension_numbers<[1], [0], [0], [1], [0, 0, 1, 1], [], []>} : vector<16x32xbf16>, vector<32x256xbf16>, vector<16x256xf32> -> vector<16x256xf32>
    %c0_21 = arith.constant 0 : index
    %c0_22 = arith.constant 0 : index
    %28 = vector.load %arg9[%c0_21, %c0_22] : memref<16x1xf32, #tpu.memory_space<vmem>>, vector<16x1xf32>
    %29 = vector.broadcast %28 : vector<16x1xf32> to vector<16x256xf32>
    %30 = arith.addf %27, %29 : vector<16x256xf32>
    %cst_23 = arith.constant 0.000000e+00 : f32
    %31 = vector.broadcast %cst_23 : f32 to vector<16x256xf32>
    %32 = arith.maximumf %30, %31 : vector<16x256xf32>
    %c0_24 = arith.constant 0 : index
    %c0_25 = arith.constant 0 : index
    %33 = vector.load %arg10[%c0_24, %c0_25] : memref<16x1xf32, #tpu.memory_space<vmem>>, vector<16x1xf32>
    %34 = vector.broadcast %33 : vector<16x1xf32> to vector<16x256xf32>
    %35 = arith.mulf %34, %32 : vector<16x256xf32>
    %cst_26 = arith.constant dense<0.000000e+00> : vector<256xf32>
    %36 = vector.multi_reduction <add>, %35, %cst_26 [0] : vector<16x256xf32> to vector<256xf32>
    %37 = vector.shape_cast %36 : vector<256xf32> to vector<1x256xf32>
    %c0_27 = arith.constant 0 : index
    %c0_28 = arith.constant 0 : index
    %38 = vector.load %arg11[%c0_27, %c0_28] : memref<1x1xf32, #tpu.memory_space<vmem>>, vector<1x1xf32>
    %39 = vector.broadcast %38 : vector<1x1xf32> to vector<1x256xf32>
    %40 = arith.addf %37, %39 : vector<1x256xf32>
    %41 = arith.negf %40 : vector<1x256xf32>
    %42 = math.exp %41 : vector<1x256xf32>
    %cst_29 = arith.constant 1.000000e+00 : f32
    %43 = vector.broadcast %cst_29 : f32 to vector<1x256xf32>
    %44 = arith.addf %43, %42 : vector<1x256xf32>
    %45 = arith.divf %43, %44 : vector<1x256xf32>
    %cst_30 = arith.constant 5.000000e+00 : f32
    %46 = vector.broadcast %cst_30 : f32 to vector<1x256xf32>
    %47 = arith.mulf %46, %45 : vector<1x256xf32>
    %cst_31 = arith.constant 2.000000e+00 : f32
    %48 = vector.broadcast %cst_31 : f32 to vector<1x256xf32>
    %49 = arith.addf %48, %47 : vector<1x256xf32>
    %50 = vector.shape_cast %49 : vector<1x256xf32> to vector<1x1x256xf32>
    %c0_32 = arith.constant 0 : index
    %c0_33 = arith.constant 0 : index
    %c0_34 = arith.constant 0 : index
    %51 = vector.load %arg12[%c0_32, %c0_33, %c0_34] : memref<1x1x256xf32, #tpu.memory_space<vmem>>, vector<1x1x256xf32>
    tpu.vector_store %arg12[%c0_32, %c0_33, %c0_34], %50 {strides = array<i32>} : memref<1x1x256xf32, #tpu.memory_space<vmem>>, vector<1x1x256xf32>,
    return
  }
  func.func @transform_0(%arg0: i32) -> (i32, i32) {
    %c0_i32 = arith.constant 0 : i32
    %c0_i32_0 = arith.constant 0 : i32
    return %arg0, %c0_i32 : i32, i32
  }
  func.func @transform_1(%arg0: i32) -> (i32, i32) {
    %c0_i32 = arith.constant 0 : i32
    %c0_i32_0 = arith.constant 0 : i32
    %c0_i32_1 = arith.constant 0 : i32
    return %c0_i32, %c0_i32_0 : i32, i32
  }
  func.func @transform_2(%arg0: i32) -> (i32, i32) {
    %c0_i32 = arith.constant 0 : i32
    %c0_i32_0 = arith.constant 0 : i32
    %c0_i32_1 = arith.constant 0 : i32
    return %c0_i32, %c0_i32_0 : i32, i32
  }
  func.func @transform_3(%arg0: i32) -> (i32, i32) {
    %c0_i32 = arith.constant 0 : i32
    %c0_i32_0 = arith.constant 0 : i32
    %c0_i32_1 = arith.constant 0 : i32
    return %c0_i32, %c0_i32_0 : i32, i32
  }
  func.func @transform_4(%arg0: i32) -> (i32, i32) {
    %c0_i32 = arith.constant 0 : i32
    %c0_i32_0 = arith.constant 0 : i32
    %c0_i32_1 = arith.constant 0 : i32
    return %c0_i32, %c0_i32_0 : i32, i32
  }
  func.func @transform_5(%arg0: i32) -> (i32, i32) {
    %c0_i32 = arith.constant 0 : i32
    %c0_i32_0 = arith.constant 0 : i32
    %c0_i32_1 = arith.constant 0 : i32
    return %c0_i32, %c0_i32_0 : i32, i32
  }
  func.func @transform_6(%arg0: i32) -> (i32, i32) {
    %c0_i32 = arith.constant 0 : i32
    %c0_i32_0 = arith.constant 0 : i32
    %c0_i32_1 = arith.constant 0 : i32
    return %c0_i32, %c0_i32_0 : i32, i32
  }
  func.func @transform_7(%arg0: i32) -> (i32, i32) {
    %c0_i32 = arith.constant 0 : i32
    %c0_i32_0 = arith.constant 0 : i32
    %c0_i32_1 = arith.constant 0 : i32
    return %c0_i32, %c0_i32_0 : i32, i32
  }
  func.func @transform_8(%arg0: i32) -> (i32, i32) {
    %c0_i32 = arith.constant 0 : i32
    %c0_i32_0 = arith.constant 0 : i32
    %c0_i32_1 = arith.constant 0 : i32
    return %c0_i32, %c0_i32_0 : i32, i32
  }
  func.func @transform_9(%arg0: i32) -> (i32, i32) {
    %c0_i32 = arith.constant 0 : i32
    %c0_i32_0 = arith.constant 0 : i32
    %c0_i32_1 = arith.constant 0 : i32
    return %c0_i32, %c0_i32_0 : i32, i32
  }
  func.func @transform_10(%arg0: i32) -> (i32, i32) {
    %c0_i32 = arith.constant 0 : i32
    %c0_i32_0 = arith.constant 0 : i32
    %c0_i32_1 = arith.constant 0 : i32
    return %c0_i32, %c0_i32_0 : i32, i32
  }
  func.func @transform_11(%arg0: i32) -> (i32, i32, i32) {
    %c0_i32 = arith.constant 0 : i32
    %c0_i32_0 = arith.constant 0 : i32
    %c0_i32_1 = arith.constant 0 : i32
    return %arg0, %c0_i32, %c0_i32_0 : i32, i32, i32
  }
}

</mosaic_0001>

<bundles_post_ra>
// kernel: mapping_nn_forward.1
= control target key start
LH: loop header
LB: loop body
LE: loop exit
PB: predicated region body
PF: predicated region fallthrough
CT: control target
= control target key end

     0   :  { %s1486_s19 = smov 0   ;;  %s1777_s0 = inlined_call_operand.vmem [shape: f32[300,32], index: 0, kind: input, shape index: {}]   ;;  %s1778_s1 = inlined_call_operand.vmem [shape: bf16[128,32], index: 1, kind: input, shape index: {}]   ;;  %s1779_s2 = inlined_call_operand.vmem [shape: f32[128,1], index: 2, kind: input, shape index: {}]   ;;  %s1780_s3 = inlined_call_operand.vmem [shape: bf16[64,128], index: 3, kind: input, shape index: {}]   ;;  %s1781_s4 = inlined_call_operand.vmem [shape: f32[64,1], index: 4, kind: input, shape index: {}]   ;;  %s1782_s5 = inlined_call_operand.vmem [shape: bf16[32,64], index: 5, kind: input, shape index: {}]   ;;  %s1783_s6 = inlined_call_operand.vmem [shape: f32[32,1], index: 6, kind: input, shape index: {}]   ;;  %s1784_s7 = inlined_call_operand.vmem [shape: bf16[16,32], index: 7, kind: input, shape index: {}]   ;;  %s1785_s8 = inlined_call_operand.vmem [shape: f32[16,1], index: 8, kind: input, shape index: {}]   ;;  %s1786_s9 = inlined_call_operand.vmem [shape: f32[16,1], index: 9, kind: input, shape index: {}]   ;;  %s1787_s10 = inlined_call_operand.<no memory space> [shape: f32[1,1], index: 10, kind: input, shape index: {}]   ;;  %s1788_s11 = inlined_call_operand.vmem [shape: f32[2,1,256], index: 11, kind: output, shape index: {}]  }
   0x1   :  { %v16_v0 = vstv %s1787_s10 }
   0x2   :  { %17 = vst [vmem:[#allocation2] sm:$0x1] %v16_v0 }
   0x3 LB: > { %s1492_s20 = sadd.s32 4294967295, %s1420_s19   ;;  %p1289_p0 = scmp.ge.s32.totalorder %s1420_s19, 1  ;;  %s1420_s19 = sphi %s1486_s19, %s23_s19  }
   0x4   : > { %p348_p1 = scmp.lt.s32.totalorder %s1420_s19, 3 }
   0x6   : > { %p349_p2 = pnand %p1289_p0, %p348_p1 }
   0x7   : > { %s1290_s21 = sshll.u32 (!%p349_p2), %s1492_s20, 5  ;;  %p405_p4 = scmp.lt.s32.totalorder (!%p349_p2), %s1492_s20, 1 }
   0x8   : > { %352 = sbr.rel (%p349_p2) target bundleno = 943 (0x3af), region = 64  ;;  %p396_p3 = scmp.lt.s32.totalorder (!%p349_p2), %s1290_s21, 37 }
   0xd   : > { %s1790_s21 = smov (!%p396_p3, %s1290_s21), 37  ;;  %vm610_vm0 = vcmask 261120   ;;  %v488_v22 = vld [vmem:[%s1779_s2 + $0x70] sm:$0xff]  ;;  %v1422_v24 = vmov 0   ;;  %v489_v32 = vld [vmem:[%s1779_s2 + $0x78] sm:$0xff]  ;;  %v482_v41 = vld [vmem:[%s1779_s2 + $0x40] sm:$0xff] }
   0xe   : > { %s1291_s10 = sshll.u32 %s1790_s21, 3  ;;  %1403 = vset.pattern.permute.xlu0 %v1422_v24  ;;  %1405 = vset.pattern.permute.xlu2 %v1422_v24  ;;  %v486_v49 = vld [vmem:[%s1779_s2 + $0x60] sm:$0xff]  ;;  %v484_v50 = vld [vmem:[%s1779_s2 + $0x50] sm:$0xff]  ;;  %v481_v51 = vld [vmem:[%s1779_s2 + $0x38] sm:$0xff]  ;;  %vm1029_vm1 = vcmask 523264   ;;  %s1792_s20 = smov (!%p405_p4, %s1492_s20), 1 }
   0xf   : > { %s1500_s24 = scalar_lea.vmem %s1777_s0, %s1291_s10  ;;  %562 = vperm.xlu0 %1403, %v488_v22   ;;  %1404 = vset.pattern.permute.xlu1 %v1422_v24  ;;  %v487_v58 = vld [vmem:[%s1779_s2 + $0x68] sm:$0xff]  ;;  %v485_v61 = vld [vmem:[%s1779_s2 + $0x58] sm:$0xff]  ;;  %v476_v62 = vld [vmem:[%s1779_s2 + $0x10] sm:$0xff]  ;;  %s1292_s30 = sshll.u32 %s1792_s20, 1  ;;  %vm1224_vm10 = vcmask 1040384  }
  0x10   : > { %v424_v1 = vld [vmem:[%s1500_s24 + $0x70] sm:$0xff]  ;;  %v425_v2 = vld [vmem:[%s1500_s24 + $0x78] sm:$0xff]  ;;  %v422_v7 = vld [vmem:[%s1500_s24 + $0x60] sm:$0xff]  ;;  %552 = vperm.xlu1 %1404, %v486_v49   ;;  %542 = vperm.xlu2 %1405, %v484_v50   ;;  %s408_s13 = scalar_lea.vmem %s1788_s11, %s1292_s30 }
  0x11   : > { %v440_v3 = vld [vmem:[%s1500_s24 + $0xf0] sm:$0xff]  ;;  %v449_v4 = vpack.c.bf16 %v425_v2, %v424_v1  ;;  %v441_v5 = vld [vmem:[%s1500_s24 + $0xf8] sm:$0xff]  ;;  %v423_v8 = vld [vmem:[%s1500_s24 + $0x68] sm:$0xff] }
  0x12   : > { %v457_v6 = vpack.c.bf16 %v441_v5, %v440_v3  ;;  %v438_v10 = vld [vmem:[%s1500_s24 + $0xe0] sm:$0xff]  ;;  %v439_v11 = vld [vmem:[%s1500_s24 + $0xe8] sm:$0xff]  ;;  %v448_v13 = vpack.c.bf16 %v423_v8, %v422_v7  ;;  %v420_v17 = vld [vmem:[%s1500_s24 + $0x50] sm:$0xff] }
  0x13   : > { %v657_v9 = vsel %vm610_vm0, %v449_v4, 0  ;;  %v456_v14 = vpack.c.bf16 %v439_v11, %v438_v10  ;;  %v421_v18 = vld [vmem:[%s1500_s24 + $0x58] sm:$0xff]  ;;  %v436_v19 = vld [vmem:[%s1500_s24 + $0xd0] sm:$0xff]  ;;  %v418_v27 = vld [vmem:[%s1500_s24 + $0x40] sm:$0xff] }
  0x14   : > { %683 = vmatpush.bf16.xpose.msra.mxu0 %v657_v9  ;;  %v681_v12 = vsel %vm610_vm0, %v457_v6, 0  ;;  %v654_v15 = vsel %vm610_vm0, %v448_v13, 0  ;;  %v437_v20 = vld [vmem:[%s1500_s24 + $0xd8] sm:$0xff]  ;;  %v447_v21 = vpack.c.bf16 %v421_v18, %v420_v17  ;;  %v419_v28 = vld [vmem:[%s1500_s24 + $0x48] sm:$0xff]  ;;  %v434_v29 = vld [vmem:[%s1500_s24 + $0xc0] sm:$0xff] }
  0x15   : > { %732 = vmatpush.bf16.xpose.msra.mxu1 %v681_v12  ;;  %v678_v16 = vsel %vm610_vm0, %v456_v14, 0  ;;  %v455_v23 = vpack.c.bf16 %v437_v20, %v436_v19  ;;  %v435_v30 = vld [vmem:[%s1500_s24 + $0xc8] sm:$0xff]  ;;  %v446_v31 = vpack.c.bf16 %v419_v28, %v418_v27  ;;  %v416_v36 = vld [vmem:[%s1500_s24 + $0x30] sm:$0xff]  ;;  %v417_v37 = vld [vmem:[%s1500_s24 + $0x38] sm:$0xff] }
  0x16   : > { %v651_v25 = vsel %vm610_vm0, %v447_v21, 0  ;;  %v454_v33 = vpack.c.bf16 %v435_v30, %v434_v29  ;;  %v432_v38 = vld [vmem:[%s1500_s24 + $0xb0] sm:$0xff]  ;;  %v433_v39 = vld [vmem:[%s1500_s24 + $0xb8] sm:$0xff]  ;;  %v445_v40 = vpack.c.bf16 %v417_v37, %v416_v36  ;;  %v414_v45 = vld [vmem:[%s1500_s24 + $0x20] sm:$0xff] }
  0x17   : > { %v675_v26 = vsel %vm610_vm0, %v455_v23, 0  ;;  %567 = vperm.xlu0 %1403, %v489_v32   ;;  %v648_v34 = vsel %vm610_vm0, %v446_v31, 0  ;;  %v453_v42 = vpack.c.bf16 %v433_v39, %v432_v38  ;;  %v415_v46 = vld [vmem:[%s1500_s24 + $0x28] sm:$0xff]  ;;  %v430_v47 = vld [vmem:[%s1500_s24 + $0xa0] sm:$0xff]  ;;  %v412_v56 = vld [vmem:[%s1500_s24 + $0x10] sm:$0xff] }
  0x18   : > { %v672_v35 = vsel %vm610_vm0, %v454_v33, 0  ;;  %v645_v43 = vsel %vm610_vm0, %v445_v40, 0  ;;  %v431_v48 = vld [vmem:[%s1500_s24 + $0xa8] sm:$0xff]  ;;  %v444_v52 = vpack.c.bf16 %v415_v46, %v414_v45  ;;  %v413_v57 = vld [vmem:[%s1500_s24 + $0x18] sm:$0xff]  ;;  %v428_v59 = vld [vmem:[%s1500_s24 + $0x90] sm:$0xff]  ;;  %557 = vperm.xlu1 %1404, %v487_v58   ;;  %547 = vperm.xlu2 %1405, %v485_v61  }
  0x19   : > { %v669_v44 = vsel %vm610_vm0, %v453_v42, 0  ;;  %v452_v53 = vpack.c.bf16 %v431_v48, %v430_v47  ;;  %v429_v60 = vld [vmem:[%s1500_s24 + $0x98] sm:$0xff]  ;;  %v443_v63 = vpack.c.bf16 %v413_v57, %v412_v56  ;;  %v410_v3 = vld [vmem:[%s1500_s24] sm:$0xff]  ;;  %v411_v4 = vld [vmem:[%s1500_s24 + $0x8] sm:$0xff] }
  0x1a   : > { %v642_v54 = vsel %vm610_vm0, %v444_v52, 0  ;;  %v451_v0 = vpack.c.bf16 %v429_v60, %v428_v59  ;;  %v426_v5 = vld [vmem:[%s1500_s24 + $0x80] sm:$0xff]  ;;  %v427_v6 = vld [vmem:[%s1500_s24 + $0x88] sm:$0xff]  ;;  %v480_v8 = vld [vmem:[%s1779_s2 + $0x30] sm:$0xff]  ;;  %v442_v10 = vpack.c.bf16 %v411_v4, %v410_v3 }
  0x1b   : > { %v666_v55 = vsel %vm610_vm0, %v452_v53, 0  ;;  %v639_v1 = vsel %vm610_vm0, %v443_v63, 0  ;;  %v483_v7 = vld [vmem:[%s1779_s2 + $0x48] sm:$0xff]  ;;  %v450_v11 = vpack.c.bf16 %v427_v6, %v426_v5  ;;  %v478_v14 = vld [vmem:[%s1779_s2 + $0x20] sm:$0xff]  ;;  %v477_v17 = vld [vmem:[%s1779_s2 + $0x18] sm:$0xff] }
  0x1c   : > { %684 = vmatpush.bf16.xpose.msra.mxu0 %v654_v15  ;;  %v663_v2 = vsel %vm610_vm0, %v451_v0, 0  ;;  %v475_v9 = vld [vmem:[%s1779_s2 + $0x8] sm:$0xff]  ;;  %v636_v12 = vsel %vm610_vm0, %v442_v10, 0  ;;  %v474_v18 = vld [vmem:[%s1779_s2] sm:$0xff]  ;;  %v1381_v20 = vld [vmem:[%s1778_s1 + $0x10] sm:$0xff] }
  0x1d   : > { %733 = vmatpush.bf16.xpose.msra.mxu1 %v678_v16  ;;  %v660_v13 = vsel %vm610_vm0, %v450_v11, 0  ;;  %v479_v15 = vld [vmem:[%s1779_s2 + $0x28] sm:$0xff]  ;;  %v1379_v16 = vld [vmem:[%s1778_s1] sm:$0xff]  ;;  %v1382_v21 = vld [vmem:[%s1778_s1 + $0x18] sm:$0xff] }
  0x1e   : > { %v1380_v19 = vld [vmem:[%s1778_s1 + $0x8] sm:$0xff]  ;;  %v843_v22 = vld [vmem:[%s1781_s4 + $0x30] sm:$0xff]  ;;  %v841_v23 = vld [vmem:[%s1781_s4 + $0x20] sm:$0xff] }
  0x1f   : > { %532 = vperm.xlu0 %1403, %v482_v41   ;;  %v842_v24 = vld [vmem:[%s1781_s4 + $0x28] sm:$0xff]  ;;  %v837_v27 = vld [vmem:[%s1781_s4] sm:$0xff]  ;;  %v997_v28 = vld [vmem:[%s1783_s6 + $0x10] sm:$0xff] }
  0x20   : > { %537 = vperm.xlu1 %1404, %v483_v7   ;;  %522 = vperm.xlu2 %1405, %v480_v8   ;;  %v844_v29 = vld [vmem:[%s1781_s4 + $0x38] sm:$0xff]  ;;  %v996_v31 = vld [vmem:[%s1783_s6 + $0x8] sm:$0xff]  ;;  %v839_v36 = vld [vmem:[%s1781_s4 + $0x10] sm:$0xff] }
  0x21   : > { %v998_v30 = vld [vmem:[%s1783_s6 + $0x18] sm:$0xff]  ;;  %v1384_v32 = vld [vmem:[%s1778_s1 + $0x28] sm:$0xff]  ;;  %v1385_v40 = vld [vmem:[%s1778_s1 + $0x30] sm:$0xff] }
  0x22   : > { %v1141_v37 = vld [vmem:[%s1786_s9 + $0x8] sm:$0xff]  ;;  %v1386_v46 = vld [vmem:[%s1778_s1 + $0x38] sm:$0xff] }
  0x23   : > { %v838_v41 = vld [vmem:[%s1781_s4 + $0x8] sm:$0xff] }
  0x24   : > { %685 = vmatpush.bf16.xpose.msra.mxu0 %v651_v25  ;;  %v840_v25 = vld [vmem:[%s1781_s4 + $0x18] sm:$0xff]  ;;  %v1089_v49 = vld [vmem:[%s1785_s8 + $0x8] sm:$0xff] }
  0x25   : > { %734 = vmatpush.bf16.xpose.msra.mxu1 %v675_v26  ;;  %v1383_v26 = vld [vmem:[%s1778_s1 + $0x20] sm:$0xff] }
  0x27   : > { %527 = vperm.xlu0 %1403, %v481_v51   ;;  %v1170_v51 = vld [vmem:[#allocation2] sm:$0x1] }
  0x28   : > { %512 = vperm.xlu1 %1404, %v478_v14   ;;  %517 = vperm.xlu2 %1405, %v479_v15  }
  0x2c   : > { %686 = vmatpush.bf16.xpose.msra.mxu0 %v648_v34  ;;  %v1088_v34 = vld [vmem:[%s1785_s8] sm:$0xff] }
  0x2d   : > { %735 = vmatpush.bf16.xpose.msra.mxu1 %v672_v35  ;;  %v1140_v35 = vld [vmem:[%s1786_s9] sm:$0xff] }
  0x2f   : > { %502 = vperm.xlu0 %1403, %v476_v62  }
  0x30   : > { %507 = vperm.xlu1 %1404, %v477_v17   ;;  %492 = vperm.xlu2 %1405, %v474_v18  }
  0x34   : > { %687 = vmatpush.bf16.xpose.msra.mxu0 %v645_v43 }
  0x35   : > { %736 = vmatpush.bf16.xpose.msra.mxu1 %v669_v44  ;;  %v995_v44 = vld [vmem:[%s1783_s6] sm:$0xff] }
  0x37   : > { %497 = vperm.xlu0 %1403, %v475_v9  }
  0x38   : > { %877 = vperm.xlu1 %1404, %v843_v22   ;;  %882 = vperm.xlu2 %1405, %v844_v29  }
  0x3c   : > { %688 = vmatpush.bf16.xpose.msra.mxu0 %v642_v54 }
  0x3d   : > { %737 = vmatpush.bf16.xpose.msra.mxu1 %v666_v55 }
  0x3f   : > { %867 = vperm.xlu0 %1403, %v841_v23  }
  0x40   : > { %872 = vperm.xlu1 %1404, %v842_v24   ;;  %857 = vperm.xlu2 %1405, %v839_v36  }
  0x44   : > { %689 = vmatpush.bf16.xpose.msra.mxu0 %v639_v1 }
  0x45   : > { %738 = vmatpush.bf16.xpose.msra.mxu1 %v663_v2 }
  0x47   : > { %862 = vperm.xlu0 %1403, %v840_v25  }
  0x48   : > { %847 = vperm.xlu1 %1404, %v837_v27   ;;  %852 = vperm.xlu2 %1405, %v838_v41  }
  0x4c   : > { %690 = vmatpush.bf16.xpose.msra.mxu0 %v636_v12 }
  0x4d   : > { %739 = vmatpush.bf16.xpose.msra.mxu1 %v660_v13 }
  0x4f   : > { %1011 = vperm.xlu0 %1403, %v997_v28  }
  0x50   : > { %1016 = vperm.xlu1 %1404, %v998_v30   ;;  %1001 = vperm.xlu2 %1405, %v995_v44  }
  0x53   : > { %1325 = vmatmul.msk.bf16.vlgmr.msra.gmra.mxu0 %vm610_vm0, %v1379_v16 }
  0x54   : > { %1333 = vmatmul.msk.bf16.vlgmr.msra.gmra.mxu1 %vm610_vm0, %v1379_v16 }
  0x57   : > { %1006 = vperm.xlu0 %1403, %v996_v31  }
  0x58   : > { %1092 = vperm.xlu1 %1404, %v1088_v34   ;;  %1097 = vperm.xlu2 %1405, %v1089_v49  }
  0x5f   : > { %1144 = vperm.xlu0 %1403, %v1140_v35  }
  0x60   : > { %1149 = vperm.xlu1 %1404, %v1141_v37   ;;  %1173 = vperm.xlu2 %1405, %v1170_v51  }
  0x63   : > { %1326 = vmatmul.msk.bf16.gmra.mxu0 %vm610_vm0, %v1380_v19 }
  0x64   : > { %1334 = vmatmul.msk.bf16.gmra.mxu1 %vm610_vm0, %v1380_v19 }
  0x6a   : > { %v1669_v38 = vpop.permute.xlu2 %542 }
  0x72   : > { %v1681_v42 = vpop.permute.xlu2 %547 }
  0x73   : > { %1327 = vmatmul.msk.bf16.gmra.mxu0 %vm610_vm0, %v1381_v20 }
  0x74   : > { %1335 = vmatmul.msk.bf16.gmra.mxu1 %vm610_vm0, %v1381_v20 }
  0x7a   : > { %v523_v47 = vpop.permute.xlu2 %522 }
  0x81   : > { %v1655_v33 = vpop.permute.xlu0 %562 }
  0x82   : > { %v1688_v45 = vpop.permute.xlu1 %552  ;;  %v518_v52 = vpop.permute.xlu2 %517 }
  0x83   : > { %1328 = vmatmul.msk.bf16.gmra.mxu0 %vm610_vm0, %v1382_v21 }
  0x84   : > { %1336 = vmatmul.msk.bf16.gmra.mxu1 %vm610_vm0, %v1382_v21 }
  0x89   : > { %v1671_v39 = vpop.permute.xlu0 %567 }
  0x8a   : > { %v1700_v50 = vpop.permute.xlu1 %557  ;;  %v493_v57 = vpop.permute.xlu2 %492 }
  0x91   : > { %v1683_v43 = vpop.permute.xlu0 %532 }
  0x92   : > { %v1702_v56 = vpop.permute.xlu1 %537 }
  0x93   : > { %1329 = vmatmul.msk.bf16.gmra.mxu0 %vm610_vm0, %v1383_v26 }
  0x94   : > { %1337 = vmatmul.msk.bf16.gmra.mxu1 %vm610_vm0, %v1383_v26 }
  0x99   : > { %v1693_v48 = vpop.permute.xlu0 %527 }
  0x9a   : > { %v513_v5 = vpop.permute.xlu1 %512 }
  0xa1   : > { %v503_v53 = vpop.permute.xlu0 %502 }
  0xa2   : > { %v508_v10 = vpop.permute.xlu1 %507 }
  0xa3   : > { %1330 = vmatmul.msk.bf16.gmra.mxu0 %vm610_vm0, %v1384_v32 }
  0xa4   : > { %1338 = vmatmul.msk.bf16.gmra.mxu1 %vm610_vm0, %v1384_v32 }
  0xa9   : > { %v498_v58 = vpop.permute.xlu0 %497 }
  0xb3   : > { %1331 = vmatmul.msk.bf16.gmra.mxu0 %vm610_vm0, %v1385_v40 }
  0xb4   : > { %1339 = vmatmul.msk.bf16.gmra.mxu1 %vm610_vm0, %v1385_v40 }
  0xc3   : > { %1332 = vmatmul.msk.bf16.gmra.mxu0 %vm610_vm0, %v1386_v46 }
  0xc4   : > { %1340 = vmatmul.msk.bf16.gmra.mxu1 %vm610_vm0, %v1386_v46 }
  0xd0   : > { %v692_v54 = vpop.f32.mrf.mxu0 }
  0xd1   : > { %v741_v55 = vpop.f32.mrf.mxu1  ;;  %v693_v59 = vadd.f32 %v692_v54, %v493_v57 }
  0xd2   : > { %v742_v60 = vadd.f32 %v741_v55, %v493_v57 }
  0xd3   : > { %v781_v1 = vmax.f32 %v693_v59, 0.0 }
  0xd4   : > { %v782_v3 = vmax.f32 %v742_v60, 0.0 }
  0xd8   : > { %v694_v61 = vpop.f32.mrf.mxu0 }
  0xd9   : > { %v695_v62 = vadd.f32 %v694_v61, %v498_v58  ;;  %v743_v63 = vpop.f32.mrf.mxu1 }
  0xda   : > { %v744_v0 = vadd.f32 %v743_v63, %v498_v58 }
  0xdb   : > { %v783_v2 = vmax.f32 %v695_v62, 0.0 }
  0xdc   : > { %v784_v4 = vmax.f32 %v744_v0, 0.0 }
  0xdd   : > { %v1704_v6 = vpack.c.bf16 %v783_v2, %v781_v1 }
  0xde   : > { %v1706_v7 = vpack.c.bf16 %v784_v4, %v782_v3 }
  0xe0   : > { %v697_v8 = vpop.f32.mrf.mxu0 }
  0xe1   : > { %v746_v9 = vpop.f32.mrf.mxu1  ;;  %v698_v11 = vadd.f32 %v697_v8, %v503_v53 }
  0xe2   : > { %v747_v12 = vadd.f32 %v746_v9, %v503_v53 }
  0xe3   : > { %v785_v17 = vmax.f32 %v698_v11, 0.0 }
  0xe4   : > { %v786_v19 = vmax.f32 %v747_v12, 0.0 }
  0xe8   : > { %v699_v13 = vpop.f32.mrf.mxu0 }
  0xe9   : > { %v700_v14 = vadd.f32 %v699_v13, %v508_v10  ;;  %v748_v15 = vpop.f32.mrf.mxu1 }
  0xea   : > { %v749_v16 = vadd.f32 %v748_v15, %v508_v10 }
  0xeb   : > { %v787_v18 = vmax.f32 %v700_v14, 0.0 }
  0xec   : > { %v788_v20 = vmax.f32 %v749_v16, 0.0 }
  0xed   : > { %v1708_v21 = vpack.c.bf16 %v787_v18, %v785_v17 }
  0xee   : > { %v1710_v22 = vpack.c.bf16 %v788_v20, %v786_v19 }
  0xf0   : > { %v702_v23 = vpop.f32.mrf.mxu0 }
  0xf1   : > { %v751_v24 = vpop.f32.mrf.mxu1  ;;  %v703_v25 = vadd.f32 %v702_v23, %v513_v5 }
  0xf2   : > { %v752_v26 = vadd.f32 %v751_v24, %v513_v5 }
  0xf3   : > { %v789_v31 = vmax.f32 %v703_v25, 0.0 }
  0xf4   : > { %v790_v34 = vmax.f32 %v752_v26, 0.0 }
  0xf8   : > { %v704_v27 = vpop.f32.mrf.mxu0 }
  0xf9   : > { %v705_v28 = vadd.f32 %v704_v27, %v518_v52  ;;  %v753_v29 = vpop.f32.mrf.mxu1 }
  0xfa   : > { %v754_v30 = vadd.f32 %v753_v29, %v518_v52 }
  0xfb   : > { %v791_v32 = vmax.f32 %v705_v28, 0.0 }
  0xfc   : > { %v792_v35 = vmax.f32 %v754_v30, 0.0 }
  0xfd   : > { %v1712_v36 = vpack.c.bf16 %v791_v32, %v789_v31 }
  0xfe   : > { %v1714_v37 = vpack.c.bf16 %v792_v35, %v790_v34 }
 0x100   : > { %v707_v40 = vpop.f32.mrf.mxu0 }
 0x101   : > { %v756_v41 = vpop.f32.mrf.mxu1  ;;  %v708_v44 = vadd.f32 %v707_v40, %v523_v47 }
 0x102   : > { %v757_v46 = vadd.f32 %v756_v41, %v523_v47 }
 0x103   : > { %v793_v55 = vmax.f32 %v708_v44, 0.0 }
 0x104   : > { %v794_v57 = vmax.f32 %v757_v46, 0.0 }
 0x108   : > { %v709_v49 = vpop.f32.mrf.mxu0 }
 0x109   : > { %v710_v51 = vadd.f32 %v709_v49, %v1693_v48  ;;  %v758_v53 = vpop.f32.mrf.mxu1 }
 0x10a   : > { %v759_v54 = vadd.f32 %v758_v53, %v1693_v48 }
 0x10b   : > { %v795_v52 = vmax.f32 %v710_v51, 0.0 }
 0x10c   : > { %v796_v58 = vmax.f32 %v759_v54, 0.0 }
 0x10d   : > { %v1718_v59 = vpack.c.bf16 %v795_v52, %v793_v55 }
 0x10e   : > { %v1720_v60 = vpack.c.bf16 %v796_v58, %v794_v57 }
 0x110   : > { %v712_v61 = vpop.f32.mrf.mxu0 }
 0x111   : > { %v761_v62 = vpop.f32.mrf.mxu1 }
 0x112   : > { %v762_v51 = vadd.f32 %v761_v62, %v1683_v43 }
 0x114   : > { %v798_v58 = vmax.f32 %v762_v51, 0.0 }
 0x118   : > { %v714_v63 = vpop.f32.mrf.mxu0 }
 0x119   : > { %v763_v0 = vpop.f32.mrf.mxu1 }
 0x11a   : > { %v764_v41 = vadd.f32 %v763_v0, %v1702_v56 }
 0x11c   : > { %v800_v55 = vmax.f32 %v764_v41, 0.0 }
 0x120   : > { %v717_v1 = vpop.f32.mrf.mxu0 }
 0x121   : > { %v766_v47 = vpop.f32.mrf.mxu1 }
 0x128   : > { %v719_v2 = vpop.f32.mrf.mxu0 }
 0x129   : > { %v768_v3 = vpop.f32.mrf.mxu1 }
 0x12a   : > { %v769_v29 = vadd.f32 %v768_v3, %v1681_v42 }
 0x12c   : > { %v804_v44 = vmax.f32 %v769_v29, 0.0 }
 0x130   : > { %v722_v4 = vpop.f32.mrf.mxu0 }
 0x131   : > { %v771_v5 = vpop.f32.mrf.mxu1  ;;  %v723_v19 = vadd.f32 %v722_v4, %v1688_v45  ;;  %v883_v4 = vpop.permute.xlu2 %882 }
 0x132   : > { %v772_v24 = vadd.f32 %v771_v5, %v1688_v45  ;;  %v715_v45 = vadd.f32 %v714_v63, %v1702_v56  ;;  %v830_v56 = vpack.c.bf16 %v800_v55, %v798_v58  ;;  %v878_v5 = vpop.permute.xlu1 %877 }
 0x133   : > { %v805_v32 = vmax.f32 %v723_v19, 0.0 }
 0x134   : > { %v806_v34 = vmax.f32 %v772_v24, 0.0  ;;  %v799_v54 = vmax.f32 %v715_v45, 0.0 }
 0x138   : > { %v724_v8 = vpop.f32.mrf.mxu0 }
 0x139   : > { %v773_v48 = vpop.f32.mrf.mxu1  ;;  %v725_v14 = vadd.f32 %v724_v8, %v1700_v50 }
 0x13a   : > { %v774_v17 = vadd.f32 %v773_v48, %v1700_v50  ;;  %v718_v50 = vadd.f32 %v717_v1, %v1669_v38 }
 0x13b   : > { %v807_v27 = vmax.f32 %v725_v14, 0.0 }
 0x13c   : > { %v808_v30 = vmax.f32 %v774_v17, 0.0  ;;  %v801_v49 = vmax.f32 %v718_v50, 0.0 }
 0x13d   : > { %v833_v40 = vpack.c.bf16 %v807_v27, %v805_v32 }
 0x13e   : > { %v834_v46 = vpack.c.bf16 %v808_v30, %v806_v34 }
 0x140   : > { %v727_v9 = vpop.f32.mrf.mxu0 }
 0x141   : > { %v776_v10 = vpop.f32.mrf.mxu1  ;;  %v728_v11 = vadd.f32 %v727_v9, %v1655_v33  ;;  %v868_v9 = vpop.permute.xlu0 %867 }
 0x142   : > { %v777_v12 = vadd.f32 %v776_v10, %v1655_v33  ;;  %v720_v33 = vadd.f32 %v719_v2, %v1681_v42  ;;  %v713_v42 = vadd.f32 %v712_v61, %v1683_v43  ;;  %v1387_v43 = vld [vmem:[%s1780_s3] sm:$0xff]  ;;  %v858_v10 = vpop.permute.xlu2 %857 }
 0x143   : > { %v809_v20 = vmax.f32 %v728_v11, 0.0 }
 0x144   : > { %v810_v25 = vmax.f32 %v777_v12, 0.0  ;;  %v803_v35 = vmax.f32 %v720_v33, 0.0  ;;  %v797_v57 = vmax.f32 %v713_v42, 0.0  ;;  %v873_v12 = vpop.permute.xlu1 %872 }
 0x146   : > { %v829_v63 = vpack.c.bf16 %v799_v54, %v797_v57 }
 0x148   : > { %v729_v13 = vpop.f32.mrf.mxu0 }
 0x149   : > { %v730_v15 = vadd.f32 %v729_v13, %v1671_v39  ;;  %v778_v16 = vpop.f32.mrf.mxu1 }
 0x14a   : > { %v779_v18 = vadd.f32 %v778_v16, %v1671_v39  ;;  %v767_v39 = vadd.f32 %v766_v47, %v1669_v38  ;;  %v831_v38 = vpack.c.bf16 %v803_v35, %v801_v49  ;;  %v853_v45 = vpop.permute.xlu2 %852 }
 0x14b   : > { %v811_v23 = vmax.f32 %v730_v15, 0.0 }
 0x14c   : > { %v812_v26 = vmax.f32 %v779_v18, 0.0  ;;  %v802_v53 = vmax.f32 %v767_v39, 0.0  ;;  %v848_v42 = vpop.permute.xlu1 %847 }
 0x14d   : > { %v835_v28 = vpack.c.bf16 %v811_v23, %v809_v20 }
 0x14e   : > { %v836_v31 = vpack.c.bf16 %v812_v26, %v810_v25  ;;  %v832_v52 = vpack.c.bf16 %v804_v44, %v802_v53  ;;  %v863_v25 = vpop.permute.xlu0 %862 }
 0x14f   : > { %909 = vmatpush.bf16.msra.mxu2 %v835_v28 }
 0x150   : > { %938 = vmatpush.bf16.msra.mxu3 %v836_v31 }
 0x153   : > { %910 = vmatpush.bf16.msra.mxu2 %v833_v40 }
 0x154   : > { %939 = vmatpush.bf16.msra.mxu3 %v834_v46 }
 0x157   : > { %911 = vmatpush.bf16.msra.mxu2 %v831_v38 }
 0x158   : > { %940 = vmatpush.bf16.msra.mxu3 %v832_v52 }
 0x15b   : > { %912 = vmatpush.bf16.msra.mxu2 %v829_v63 }
 0x15c   : > { %941 = vmatpush.bf16.msra.mxu3 %v830_v56 }
 0x15f   : > { %913 = vmatpush.bf16.msra.mxu2 %v1718_v59 }
 0x160   : > { %942 = vmatpush.bf16.msra.mxu3 %v1720_v60 }
 0x163   : > { %914 = vmatpush.bf16.msra.mxu2 %v1712_v36  ;;  %v1388_v36 = vld [vmem:[%s1780_s3 + $0x8] sm:$0xff] }
 0x164   : > { %943 = vmatpush.bf16.msra.mxu3 %v1714_v37 }
 0x167   : > { %915 = vmatpush.bf16.msra.mxu2 %v1708_v21  ;;  %v1389_v21 = vld [vmem:[%s1780_s3 + $0x10] sm:$0xff] }
 0x168   : > { %944 = vmatpush.bf16.msra.mxu3 %v1710_v22 }
 0x16b   : > { %916 = vmatpush.bf16.msra.mxu2 %v1704_v6  ;;  %v1390_v6 = vld [vmem:[%s1780_s3 + $0x18] sm:$0xff] }
 0x16c   : > { %945 = vmatpush.bf16.msra.mxu3 %v1706_v7 }
 0x16e   : > { %917 = vmatmul.bf16.vlgmr.msra.gmra.mxu2 %v1387_v43 }
 0x16f   : > { %946 = vmatmul.bf16.vlgmr.msra.gmra.mxu3 %v1387_v43 }
 0x17e   : > { %922 = vmatmul.bf16.gmra.mxu2 %v1388_v36 }
 0x17f   : > { %951 = vmatmul.bf16.gmra.mxu3 %v1388_v36 }
 0x18e   : > { %927 = vmatmul.bf16.gmra.mxu2 %v1389_v21 }
 0x18f   : > { %956 = vmatmul.bf16.gmra.mxu3 %v1389_v21 }
 0x19e   : > { %932 = vmatmul.bf16.gmra.mxu2 %v1390_v6 }
 0x19f   : > { %961 = vmatmul.bf16.gmra.mxu3 %v1390_v6 }
 0x1f1   : > { %v918_v7 = vpop.f32.mrf.mxu2 }
 0x1f2   : > { %v947_v22 = vpop.f32.mrf.mxu3  ;;  %v919_v54 = vadd.f32 %v918_v7, %v848_v42  ;;  %v1392_v7 = vld [vmem:[%s1782_s5 + $0x8] sm:$0xff] }
 0x1f3   : > { %v948_v55 = vadd.f32 %v947_v22, %v848_v42 }
 0x1f4   : > { %v967_v43 = vmax.f32 %v919_v54, 0.0 }
 0x1f5   : > { %v968_v36 = vmax.f32 %v948_v55, 0.0 }
 0x1f9   : > { %v920_v37 = vpop.f32.mrf.mxu2 }
 0x1fa   : > { %v949_v59 = vpop.f32.mrf.mxu3  ;;  %v921_v41 = vadd.f32 %v920_v37, %v853_v45  ;;  %v1391_v37 = vld [vmem:[%s1782_s5] sm:$0xff] }
 0x1fb   : > { %v950_v49 = vadd.f32 %v949_v59, %v853_v45 }
 0x1fc   : > { %v969_v57 = vmax.f32 %v921_v41, 0.0 }
 0x1fd   : > { %v970_v63 = vmax.f32 %v950_v49, 0.0 }
 0x1fe   : > { %v987_v21 = vpack.c.bf16 %v969_v57, %v967_v43 }
 0x1ff   : > { %v988_v6 = vpack.c.bf16 %v970_v63, %v968_v36 }
 0x201   : > { %v923_v60 = vpop.f32.mrf.mxu2 }
 0x202   : > { %v952_v61 = vpop.f32.mrf.mxu3  ;;  %v924_v39 = vadd.f32 %v923_v60, %v858_v10 }
 0x203   : > { %v953_v35 = vadd.f32 %v952_v61, %v858_v10  ;;  %v1002_v10 = vpop.permute.xlu2 %1001 }
 0x204   : > { %v971_v38 = vmax.f32 %v924_v39, 0.0 }
 0x205   : > { %v972_v52 = vmax.f32 %v953_v35, 0.0 }
 0x209   : > { %v925_v62 = vpop.f32.mrf.mxu2 }
 0x20a   : > { %v954_v0 = vpop.f32.mrf.mxu3  ;;  %v926_v28 = vadd.f32 %v925_v62, %v863_v25  ;;  %v1012_v62 = vpop.permute.xlu0 %1011 }
 0x20b   : > { %v955_v31 = vadd.f32 %v954_v0, %v863_v25  ;;  %v1098_v39 = vpop.permute.xlu2 %1097 }
 0x20c   : > { %v973_v44 = vmax.f32 %v926_v28, 0.0  ;;  %v1393_v28 = vld [vmem:[%s1784_s7] sm:$0xff] }
 0x20d   : > { %v974_v51 = vmax.f32 %v955_v31, 0.0 }
 0x20e   : > { %v989_v58 = vpack.c.bf16 %v973_v44, %v971_v38 }
 0x20f   : > { %v990_v56 = vpack.c.bf16 %v974_v51, %v972_v52 }
 0x211   : > { %v928_v1 = vpop.f32.mrf.mxu2 }
 0x212   : > { %v957_v47 = vpop.f32.mrf.mxu3  ;;  %v929_v20 = vadd.f32 %v928_v1, %v868_v9 }
 0x213   : > { %v958_v26 = vadd.f32 %v957_v47, %v868_v9  ;;  %v1017_v47 = vpop.permute.xlu1 %1016 }
 0x214   : > { %v975_v34 = vmax.f32 %v929_v20, 0.0 }
 0x215   : > { %v976_v40 = vmax.f32 %v958_v26, 0.0 }
 0x219   : > { %v930_v2 = vpop.f32.mrf.mxu2 }
 0x21a   : > { %v959_v3 = vpop.f32.mrf.mxu3  ;;  %v931_v15 = vadd.f32 %v930_v2, %v873_v12 }
 0x21b   : > { %v960_v18 = vadd.f32 %v959_v3, %v873_v12  ;;  %v1007_v3 = vpop.permute.xlu0 %1006  ;;  %v1093_v31 = vpop.permute.xlu1 %1092 }
 0x21c   : > { %v977_v29 = vmax.f32 %v931_v15, 0.0 }
 0x21d   : > { %v978_v50 = vmax.f32 %v960_v18, 0.0 }
 0x21e   : > { %v991_v46 = vpack.c.bf16 %v977_v29, %v975_v34 }
 0x21f   : > { %v992_v53 = vpack.c.bf16 %v978_v50, %v976_v40 }
 0x221   : > { %v933_v8 = vpop.f32.mrf.mxu2 }
 0x222   : > { %v962_v48 = vpop.f32.mrf.mxu3  ;;  %v934_v11 = vadd.f32 %v933_v8, %v878_v5 }
 0x223   : > { %v963_v13 = vadd.f32 %v962_v48, %v878_v5  ;;  %v1145_v42 = vpop.permute.xlu0 %1144  ;;  %v1150_v49 = vpop.permute.xlu1 %1149 }
 0x224   : > { %v979_v23 = vmax.f32 %v934_v11, 0.0 }
 0x225   : > { %v980_v33 = vmax.f32 %v963_v13, 0.0 }
 0x229   : > { %v935_v14 = vpop.f32.mrf.mxu2 }
 0x22a   : > { %v936_v16 = vadd.f32 %v935_v14, %v883_v4  ;;  %v964_v17 = vpop.f32.mrf.mxu3 }
 0x22b   : > { %v965_v19 = vadd.f32 %v964_v17, %v883_v4 }
 0x22c   : > { %v981_v24 = vmax.f32 %v936_v16, 0.0 }
 0x22d   : > { %v982_v27 = vmax.f32 %v965_v19, 0.0 }
 0x22e   : > { %v993_v30 = vpack.c.bf16 %v981_v24, %v979_v23 }
 0x22f   : > { %v994_v32 = vpack.c.bf16 %v982_v27, %v980_v33 }
 0x230   : > { %1040 = vmatpush.bf16.msrb.mxu2 %v993_v30 }
 0x231   : > { %1059 = vmatpush.bf16.msrb.mxu3 %v994_v32 }
 0x234   : > { %1041 = vmatpush.bf16.msrb.mxu2 %v991_v46 }
 0x235   : > { %1060 = vmatpush.bf16.msrb.mxu3 %v992_v53 }
 0x238   : > { %1042 = vmatpush.bf16.msrb.mxu2 %v989_v58 }
 0x239   : > { %1061 = vmatpush.bf16.msrb.mxu3 %v990_v56 }
 0x23c   : > { %1043 = vmatpush.bf16.msrb.mxu2 %v987_v21 }
 0x23d   : > { %1062 = vmatpush.bf16.msrb.mxu3 %v988_v6 }
 0x23f   : > { %1365 = vmatmul.msk.bf16.vlgmr.msrb.gmra.mxu2 %vm1029_vm1, %v1391_v37 }
 0x240   : > { %1367 = vmatmul.msk.bf16.vlgmr.msrb.gmra.mxu3 %vm1029_vm1, %v1391_v37  ;;  %v1174_v37 = vpop.permute.xlu2 %1173 }
 0x24f   : > { %1366 = vmatmul.msk.bf16.gmra.mxu2 %vm1029_vm1, %v1392_v7 }
 0x250   : > { %1368 = vmatmul.msk.bf16.gmra.mxu3 %vm1029_vm1, %v1392_v7 }
 0x2c2   : > { %v1045_v22 = vpop.f32.mrf.mxu2 }
 0x2c3   : > { %v1064_v59 = vpop.f32.mrf.mxu3  ;;  %v1046_v13 = vadd.f32 %v1045_v22, %v1002_v10 }
 0x2c4   : > { %v1065_v16 = vadd.f32 %v1064_v59, %v1002_v10 }
 0x2c5   : > { %v1074_v25 = vmax.f32 %v1046_v13, 0.0 }
 0x2c6   : > { %v1075_v26 = vmax.f32 %v1065_v16, 0.0 }
 0x2ca   : > { %v1047_v60 = vpop.f32.mrf.mxu2 }
 0x2cb   : > { %v1066_v61 = vpop.f32.mrf.mxu3  ;;  %v1048_v8 = vadd.f32 %v1047_v60, %v1007_v3  ;;  %v1176_v60 = vperm.slane %v1174_v37, 0 }
 0x2cc   : > { %v1067_v11 = vadd.f32 %v1066_v61, %v1007_v3 }
 0x2cd   : > { %v1076_v19 = vmax.f32 %v1048_v8, 0.0 }
 0x2ce   : > { %v1077_v23 = vmax.f32 %v1067_v11, 0.0 }
 0x2cf   : > { %v1084_v33 = vpack.c.bf16 %v1076_v19, %v1074_v25 }
 0x2d0   : > { %v1085_v27 = vpack.c.bf16 %v1077_v23, %v1075_v26 }
 0x2d2   : > { %v1050_v0 = vpop.f32.mrf.mxu2 }
 0x2d3   : > { %v1069_v1 = vpop.f32.mrf.mxu3  ;;  %v1051_v2 = vadd.f32 %v1050_v0, %v1012_v62 }
 0x2d4   : > { %v1070_v4 = vadd.f32 %v1069_v1, %v1012_v62 }
 0x2d5   : > { %v1078_v14 = vmax.f32 %v1051_v2, 0.0 }
 0x2d6   : > { %v1079_v17 = vmax.f32 %v1070_v4, 0.0 }
 0x2da   : > { %v1052_v5 = vpop.f32.mrf.mxu2 }
 0x2db   : > { %v1053_v48 = vadd.f32 %v1052_v5, %v1017_v47  ;;  %v1071_v9 = vpop.f32.mrf.mxu3 }
 0x2dc   : > { %v1072_v12 = vadd.f32 %v1071_v9, %v1017_v47 }
 0x2dd   : > { %v1080_v15 = vmax.f32 %v1053_v48, 0.0 }
 0x2de   : > { %v1081_v18 = vmax.f32 %v1072_v12, 0.0 }
 0x2df   : > { %v1086_v20 = vpack.c.bf16 %v1080_v15, %v1078_v14 }
 0x2e0   : > { %v1087_v24 = vpack.c.bf16 %v1081_v18, %v1079_v17 }
 0x2e1   : > { %1114 = vmatpush.bf16.msra.mxu2 %v1086_v20 }
 0x2e2   : > { %1128 = vmatpush.bf16.msra.mxu3 %v1087_v24 }
 0x2e5   : > { %1115 = vmatpush.bf16.msra.mxu2 %v1084_v33 }
 0x2e6   : > { %1129 = vmatpush.bf16.msra.mxu3 %v1085_v27 }
 0x2e8   : > { %1373 = vmatmul.msk.bf16.vlgmr.msra.gmra.mxu2 %vm610_vm0, %v1393_v28 }
 0x2e9   : > { %1374 = vmatmul.msk.bf16.vlgmr.msra.gmra.mxu3 %vm610_vm0, %v1393_v28 }
 0x36b   : > { %v1117_v29 = vpop.f32.mrf.mxu2 }
 0x36c   : > { %v1131_v30 = vpop.f32.mrf.mxu3  ;;  %v1118_v50 = vadd.f32 %v1117_v29, %v1093_v31 }
 0x36d   : > { %v1132_v32 = vadd.f32 %v1131_v30, %v1093_v31  ;;  %v1227_v31 = vlaneseq }
 0x36e   : > { %v1136_v45 = vmax.f32 %v1118_v50, 0.0 }
 0x36f   : > { %v1137_v41 = vmax.f32 %v1132_v32, 0.0  ;;  %vm1229_vm11 = vcmp.lt.s32.totalorder %v1227_v31, 256 }
 0x370   : > { %v1152_v53 = vmul.f32 %v1145_v42, %v1136_v45 }
 0x371   : > { %v1153_v38 = vmul.f32 %v1145_v42, %v1137_v41 }
 0x373   : > { %v1119_v34 = vpop.f32.mrf.mxu2 }
 0x374   : > { %v1120_v35 = vadd.f32 %v1119_v34, %v1098_v39  ;;  %v1133_v40 = vpop.f32.mrf.mxu3 }
 0x375   : > { %v1134_v44 = vadd.f32 %v1133_v40, %v1098_v39 }
 0x376   : > { %v1138_v46 = vmax.f32 %v1120_v35, 0.0 }
 0x377   : > { %v1139_v51 = vmax.f32 %v1134_v44, 0.0 }
 0x378   : > { %v1154_v54 = vmul.f32 %v1150_v49, %v1138_v46 }
 0x379   : > { %v1155_v55 = vmul.f32 %v1150_v49, %v1139_v51 }
 0x37a   : > { %v1156_v52 = vadd.f32 %v1154_v54, %v1152_v53 }
 0x37b   : > { %v1163_v57 = vadd.f32 %v1155_v55, %v1153_v38 }
 0x37c   : > { %v1157_v58 = vrot.slane %v1156_v52, 4 }
 0x37d   : > { %v1164_v63 = vrot.slane %v1163_v57, 4 }
 0x37e   : > { %v1158_v56 = vadd.f32 %v1157_v58, %v1156_v52 }
 0x37f   : > { %v1165_v43 = vadd.f32 %v1164_v63, %v1163_v57 }
 0x380   : > { %v1159_v36 = vrot.slane %v1158_v56, 2 }
 0x381   : > { %v1166_v21 = vrot.slane %v1165_v43, 2 }
 0x382   : > { %v1160_v6 = vadd.f32 %v1159_v36, %v1158_v56 }
 0x383   : > { %v1167_v7 = vadd.f32 %v1166_v21, %v1165_v43 }
 0x384   : > { %v1161_v22 = vrot.slane %v1160_v6, 1 }
 0x385   : > { %v1168_v59 = vrot.slane %v1167_v7, 1 }
 0x386   : > { %v1162_v61 = vadd.f32 %v1161_v22, %v1160_v6 }
 0x387   : > { %v1169_v62 = vadd.f32 %v1168_v59, %v1167_v7 }
 0x388   : > { %v1177_v0 = vadd.f32 %v1176_v60, %v1162_v61 }
 0x389   : > { %v1178_v1 = vadd.f32 %v1176_v60, %v1169_v62 }
 0x38a   : > { %v1375_v47 = vmul.f32 -1.442695, %v1177_v0 }
 0x38b   : > { %v1376_v2 = vmul.f32 -1.442695, %v1178_v1 }
 0x38c   : > { %1406 = vpow2.f32 %v1375_v47 }
 0x38d   : > { %1408 = vpow2.f32 %v1376_v2 }
 0x392   : > { %v1407_v3 = vpop.eup %1406 }
 0x393   : > { %v1409_v4 = vpop.eup %1408  ;;  %v1185_v5 = vadd.f32 1.0, %v1407_v3 }
 0x394   : > { %v1186_v8 = vadd.f32 1.0, %v1409_v4 }
 0x395   : > { %1410 = vrcp.f32 %v1185_v5  ;;  %v1198_v13 = vand.u32 2147483648, %v1185_v5  ;;  %v1196_v16 = vand.u32 2147483647, %v1185_v5  ;;  %vm1192_vm4 = vweird.f32 %v1185_v5 }
 0x396   : > { %1412 = vrcp.f32 %v1186_v8  ;;  %v1213_v17 = vand.u32 2147483648, %v1186_v8  ;;  %v1211_v19 = vand.u32 2147483647, %v1186_v8  ;;  %vm1207_vm6 = vweird.f32 %v1186_v8 }
 0x397   : > { %v1199_v23 = vor.u32 1.1754944e-38, %v1198_v13  ;;  %vm1197_vm7 = vcmp.eq.f32.partialorder %v1196_v16, 8.507059e+37 }
 0x398   : > { %v1214_v26 = vor.u32 1.1754944e-38, %v1213_v17  ;;  %vm1212_vm9 = vcmp.eq.f32.partialorder %v1211_v19, 8.507059e+37 }
 0x39b   : > { %v1411_v48 = vpop.eup %1410 }
 0x39c   : > { %v1413_v9 = vpop.eup %1412  ;;  %v1188_v10 = vmul.f32 %v1411_v48, %v1185_v5  ;;  %vm1193_vm2 = vweird.f32 %v1411_v48 }
 0x39d   : > { %v1203_v11 = vmul.f32 %v1413_v9, %v1186_v8  ;;  %vm1208_vm3 = vweird.f32 %v1413_v9  ;;  %vm1194_vm5 = vmor %vm1192_vm4, %vm1193_vm2 }
 0x39e   : > { %v1189_v12 = vsub.f32 1.0, %v1188_v10  ;;  %vm1209_vm8 = vmor %vm1207_vm6, %vm1208_vm3 }
 0x39f   : > { %v1204_v14 = vsub.f32 1.0, %v1203_v11 }
 0x3a0   : > { %v1190_v15 = vmul.f32 %v1411_v48, %v1189_v12 }
 0x3a1   : > { %v1205_v18 = vmul.f32 %v1413_v9, %v1204_v14 }
 0x3a2   : > { %v1191_v20 = vadd.f32 %v1411_v48, %v1190_v15 }
 0x3a3   : > { %v1206_v24 = vadd.f32 %v1413_v9, %v1205_v18 }
 0x3a4   : > { %v1195_v25 = vsel %vm1194_vm5, %v1411_v48, %v1191_v20 }
 0x3a5   : > { %v1200_v33 = vsel %vm1197_vm7, %v1199_v23, %v1195_v25  ;;  %v1210_v27 = vsel %vm1209_vm8, %v1413_v9, %v1206_v24 }
 0x3a6   : > { %v1215_v28 = vsel %vm1212_vm9, %v1214_v26, %v1210_v27  ;;  %v1217_v29 = vmul.f32 5.0, %v1200_v33 }
 0x3a7   : > { %v1218_v30 = vmul.f32 5.0, %v1215_v28 }
 0x3a8   : > { %v1219_v32 = vadd.f32 2.0, %v1217_v29 }
 0x3a9   : > { %v1220_v50 = vadd.f32 2.0, %v1218_v30 }
 0x3ab   : > { %v1223_v39 = vrot.slane %v1220_v50, 7 }
 0x3ad   : > { %v1225_v34 = vsel %vm1224_vm10, %v1219_v32, %v1223_v39 }
 0x3ae   : > { %1231 = vst.msk [vmem:[%s408_s13] sm:$0x3] %vm1229_vm11, %v1225_v34 }
 0x3af PF: > { %s23_s19 = sadd.s32 1, %s1420_s19  }
 0x3b0   : > { %p20_p5 = scmp.ge.s32.totalorder %s23_s19, 4  }
 0x3b2   :  { %22 = sbr.rel (!%p20_p5) target bundleno = 3 (0x3), region = 94 }

</bundles_post_ra>
